<compile_context>
chip_gen: v6e
topology: v6e:2x2x1
jax: 0.10.0
libtpu: 0.0.40
codegen_flags: <defaults>
</compile_context>

<pallas_src>
import functools

import jax
import jax.numpy as jnp
from jax.experimental import pallas as pl
from jax.experimental.pallas import tpu as pltpu


def _smooth_contrastive_kernel(temp_ref, logits_ref, row_out_ref,
                               m_sc, s_sc, c_sc,
                               *, alpha, eps, offset, total_n, tb, tn,
                               ragged_n):
    i = pl.program_id(0)          # row block  ("parallel")
    k = pl.program_id(1)          # col block  ("arbitrary" reduction, last)
    nk = pl.num_programs(1)

    @pl.when(k == 0)
    def _init():
        m_sc[...] = jnp.full_like(m_sc, -jnp.inf)
        s_sc[...] = jnp.zeros_like(s_sc)
        c_sc[...] = jnp.zeros_like(c_sc)

    temp = temp_ref[0, 0]                         # SMEM scalar
    raw = logits_ref[...]                         # native-dtype tile, one load

    col0 = k * tn
    row0 = i * tb

    # ---- running max in scaled space.  max commutes with the positive scale,
    #      so only the (tb,1) row max is multiplied by temp: the (tb,tn) scaled
    #      copy of the tile is never materialized (no VMEM spill). ----
    local_m = jnp.max(raw, axis=1, keepdims=True).astype(jnp.float32) * temp
    m_old = m_sc[...]
    m_new = jnp.maximum(m_old, local_m)
    m_sc[...] = m_new

    # ---- online sum-exp: the scale/subtract/exp chain has exactly one
    #      consumer (the row sum), so it stays in vregs. ----
    p_sum = jnp.sum(jnp.exp(raw.astype(jnp.float32) * temp - m_new),
                    axis=1, keepdims=True)
    s_sc[...] = s_sc[...] * jnp.exp(m_old - m_new) + p_sum

    # ---- merged target-weighted accumulator:
    #        c_i = eps * sum_j raw[i,j] + (alpha-eps) * raw[i, offset+i]
    #      (padded columns are -inf; mask them out of the plain sum only when
    #       the wrapper actually padded -> static flag, zero cost otherwise) ----
    if ragged_n:
        col_valid = (jax.lax.broadcasted_iota(jnp.int32, (tb, tn), 1)
                     + col0) < total_n
        raw_for_sum = jnp.where(col_valid, raw.astype(jnp.float32), 0.0)
    else:
        raw_for_sum = raw.astype(jnp.float32)
    c_sc[...] = c_sc[...] + eps * jnp.sum(raw_for_sum, axis=1, keepdims=True)

    # diagonal gather only on the tile(s) whose columns contain offset+row.
    diag_lo = offset + row0
    overlaps = jnp.logical_and(diag_lo < col0 + tn, diag_lo + tb > col0)

    @pl.when(overlaps)
    def _diag():
        # hit[r, c]  <=>  col0 + c == offset + row0 + r
        target_col = (jax.lax.broadcasted_iota(jnp.int32, (tb, 1), 0)
                      + (diag_lo - col0))                          # (tb, 1)
        hit = jax.lax.broadcasted_iota(jnp.int32, (tb, tn), 1) == target_col
        dsum = jnp.sum(jnp.where(hit, raw.astype(jnp.float32), 0.0),
                       axis=1, keepdims=True)
        c_sc[...] = c_sc[...] + (alpha - eps) * dsum

    @pl.when(k == nk - 1)
    def _finalize():
        # sum_j t[i,j] * logp[i,j]  =  temp * c_i - lse_i
        lse = m_sc[...] + jnp.log(s_sc[...])
        row_out_ref[...] = temp * c_sc[...] - lse


def _pick_tile(dim, target, granule):
    """Largest multiple of `granule` <= target dividing `dim`; else full dim."""
    if dim <= target:
        return dim
    t = (target // granule) * granule
    while t >= granule:
        if dim % t == 0:
            return t
        t -= granule
    return dim


def _row_granule(dtype):
    # min sublane granule: 8 for 4-byte, 16 for bf16/f16, 32 for 1-byte dtypes
    return max(8, 32 // jnp.dtype(dtype).itemsize)


def smooth_contrastive_loss(logits, T_param, *, alpha=0.9, local_rank=0,
                            block_b=256, block_n=8192, buffers=2):
    """Pallas implementation of SmoothContrastiveLoss.forward for one logits
    matrix (rows = local batch, columns = global candidates)."""
    B, N = logits.shape
    if N < 2:
        raise ValueError("need N >= 2 columns (eps = (1 - alpha) / (N - 1))")
    if not (0.0 < alpha < 1.0):
        raise ValueError("alpha must be in (0, 1)")
    offset = int(local_rank) * B
    if offset + B > N:
        raise ValueError("local_rank * batch + batch exceeds column count")

    itemsize = jnp.dtype(logits.dtype).itemsize

    # ---- row tiling: dtype-aware granule; keep >=2 row blocks when possible so
    #      the "parallel" axis can shard across v7x's 2 TensorCores. ----
    row_gran = _row_granule(logits.dtype)
    tb_target = max(block_b, row_gran)
    if B >= 2 * row_gran:
        tb_target = min(tb_target, (B // 2) // row_gran * row_gran)
    tb = _pick_tile(B, tb_target, row_gran)

    # ---- column tiling: always a multiple of 128; awkward N is padded with
    #      -inf (never collapses to one giant full-N block). ----
    col_gran = 128
    block_n = max(block_n, col_gran)
    if N % col_gran == 0:
        tn = _pick_tile(N, block_n, col_gran)
        n_pad = N
    else:
        tn = min((block_n // col_gran) * col_gran,
                 pl.cdiv(N, col_gran) * col_gran)
        n_pad = pl.cdiv(N, tn) * tn
    ragged_n = n_pad != N

    logits_in = logits
    if ragged_n:
        # -inf pads: exp() of pads is exactly 0; the row-sum path masks them.
        logits_in = jnp.pad(logits, ((0, 0), (0, n_pad - N)),
                            constant_values=-jnp.inf)

    eps = (1.0 - float(alpha)) / (N - 1)

    # temp = clip(exp(T), 1, 100): computed once, passed as a (1,1) SMEM scalar.
    temp = jnp.clip(jnp.exp(jnp.asarray(T_param, jnp.float32)), 1.0, 100.0)
    temp = jnp.reshape(temp, (1, 1))

    kernel = functools.partial(
        _smooth_contrastive_kernel, alpha=float(alpha), eps=eps,
        offset=offset, total_n=int(N), tb=tb, tn=tn, ragged_n=ragged_n)

    if buffers != 2:   # 2 == default double buffering
        logits_spec = pl.BlockSpec((tb, tn), lambda i, k: (i, k),
                                   pipeline_mode=pl.Buffered(buffers))
    else:
        logits_spec = pl.BlockSpec((tb, tn), lambda i, k: (i, k))

    # VMEM budget: pipelined input buffers + one f32 tile of elementwise
    # headroom + slack (default 256x8192 f32 tiles stay well under v7x 64 MiB).
    tile_bytes = tb * tn * itemsize
    vmem_limit = buffers * tile_bytes + tb * tn * 4 + (8 << 20)
    vmem_limit = int(min(max(vmem_limit, 32 << 20), 110 << 20))

    cost = pl.CostEstimate(
        flops=6 * B * n_pad,
        transcendentals=B * n_pad,
        bytes_accessed=B * n_pad * itemsize + B * 4 + 4)

    row_loss = pl.pallas_call(
        kernel,
        out_shape=jax.ShapeDtypeStruct((B, 1), jnp.float32),
        grid_spec=pltpu.PrefetchScalarGridSpec(
            num_scalar_prefetch=0,
            grid=(B // tb, n_pad // tn),
            in_specs=[
                pl.BlockSpec(memory_space=pltpu.SMEM),   # temp (1,1) scalar
                logits_spec,                             # streaming logits tile
            ],
            out_specs=pl.BlockSpec((tb, 1), lambda i, k: (i, 0)),
            scratch_shapes=[pltpu.VMEM((tb, 1), jnp.float32)] * 3,
        ),
        compiler_params=pltpu.CompilerParams(
            dimension_semantics=("parallel", "arbitrary"),
            vmem_limit_bytes=vmem_limit),
        cost_estimate=cost,
    )(temp, logits_in)

    # kld(batchmean) + target_entropy == -(1/B) * sum_{i,j} t_prob * logp
    return -jnp.sum(row_loss[:, 0]) / B


def smooth_contrastive_loss_ref(logits, T_param, *, alpha=0.9, local_rank=0):
    """Pure-JAX reference mirroring the PyTorch module term-by-term."""
    B, N = logits.shape
    offset = local_rank * B
    temp = jnp.clip(jnp.exp(jnp.asarray(T_param, jnp.float32)), 1.0, 100.0)
    logp = jax.nn.log_softmax(logits.astype(jnp.float32) * temp, axis=1)
    eps = (1.0 - alpha) / (N - 1)
    t_prob = jnp.full((B, N), eps, jnp.float32)
    t_prob = t_prob.at[:, offset:offset + B].add(
        jnp.eye(B, dtype=jnp.float32) * (alpha - eps))
    log_t = jnp.log(t_prob)
    kld = jnp.sum(t_prob * (log_t - logp)) / B
    t_ent = jnp.mean(jnp.sum(-t_prob * log_t, axis=1))
    return kld + t_ent


if __name__ == "__main__":
    key = jax.random.PRNGKey(0)
    alpha = 0.9                      # module asserts 0 < alpha < 1
    T_param = jnp.float32(3.9)       # nn.Parameter(torch.tensor(3.9))
    ok = True

    def check(name, out, ref, rtol, atol):
        global ok
        if not jnp.allclose(out, ref, rtol=rtol, atol=atol):
            ok = False
            print("MISMATCH", name, float(out), float(ref))

    # 1) f32, divisible N: diagonal in tile 0 (rank 0) and tile 1 (rank 20).
    k1, k2, k3 = jax.random.split(key, 3)
    logits = jax.random.normal(k1, (8, 512), dtype=jnp.float32)
    for lr in (0, 20):
        out = jax.block_until_ready(
            smooth_contrastive_loss(logits, T_param, alpha=alpha,
                                    local_rank=lr, block_b=8, block_n=128))
        ref = smooth_contrastive_loss_ref(logits, T_param, alpha=alpha,
                                          local_rank=lr)
        check(f"f32_rank{lr}", out, ref, 2e-4, 2e-4)

    # 2) f32, awkward N (500 -> padded to 512 internally, masked in-kernel).
    logits_r = jax.random.normal(k2, (8, 500), dtype=jnp.float32)
    for lr in (0, 61):
        out = jax.block_until_ready(
            smooth_contrastive_loss(logits_r, T_param, alpha=alpha,
                                    local_rank=lr, block_b=8, block_n=256))
        ref = smooth_contrastive_loss_ref(logits_r, T_param, alpha=alpha,
                                          local_rank=lr)
        check(f"ragged_rank{lr}", out, ref, 2e-4, 2e-4)

    # 3) bf16 streaming path (dtype-aware row granule of 16).
    logits_bf = jax.random.normal(k3, (16, 512), dtype=jnp.float32).astype(
        jnp.bfloat16)
    out = jax.block_until_ready(
        smooth_contrastive_loss(logits_bf, T_param, alpha=alpha,
                                local_rank=5, block_b=16, block_n=256))
    ref = smooth_contrastive_loss_ref(logits_bf, T_param, alpha=alpha,
                                      local_rank=5)
    check("bf16_rank5", out, ref, 1e-3, 1e-3)

    if ok:
        print("KERNEL_OK")
</pallas_src>

<mosaic_0001>
module attributes {stable_mosaic.version = 11 : i64} {
  func.func @_smooth_contrastive_kernel(%arg0: i32, %arg1: i32, %arg2: memref<1x1xf32, #tpu.memory_space<smem>>, %arg3: memref<8x128xf32, #tpu.memory_space<vmem>>, %arg4: memref<8x1xf32, #tpu.memory_space<vmem>>, %arg5: memref<8x1xf32, #tpu.memory_space<vmem>>, %arg6: memref<8x1xf32, #tpu.memory_space<vmem>>, %arg7: memref<8x1xf32, #tpu.memory_space<vmem>>) attributes {dimension_semantics = [#tpu.dimension_semantics<parallel>, #tpu.dimension_semantics<arbitrary>], iteration_bounds = array<i64: 1, 4>, scalar_prefetch = 0 : i64, scratch_operands = 3 : i64, tpu.core_type = #tpu.core_type<tc>, window_params = [{transform_indices = @transform_0, window_bounds = array<i64: 1, 1>}, {transform_indices = @transform_1, window_bounds = array<i64: 8, 128>}, {transform_indices = @transform_2, window_bounds = array<i64: 8, 1>}]} {
    %c0_i32 = arith.constant 0 : i32
    %0 = arith.cmpi eq, %arg1, %c0_i32 : i32
    %1 = arith.extui %0 : i1 to i32
    %c0_i32_0 = arith.constant 0 : i32
    %2 = arith.cmpi ne, %1, %c0_i32_0 : i32
    scf.if %2 {
      %cst_24 = arith.constant 0xFF800000 : f32
      %45 = vector.broadcast %cst_24 : f32 to vector<8x1xf32>
      %c0_25 = arith.constant 0 : index
      %c0_26 = arith.constant 0 : index
      %46 = vector.load %arg5[%c0_25, %c0_26] : memref<8x1xf32, #tpu.memory_space<vmem>>, vector<8x1xf32>
      tpu.vector_store %arg5[%c0_25, %c0_26], %45 {strides = array<i32>} : memref<8x1xf32, #tpu.memory_space<vmem>>, vector<8x1xf32>,
      %cst_27 = arith.constant 0.000000e+00 : f32
      %47 = vector.broadcast %cst_27 : f32 to vector<8x1xf32>
      %c0_28 = arith.constant 0 : index
      %c0_29 = arith.constant 0 : index
      %48 = vector.load %arg6[%c0_28, %c0_29] : memref<8x1xf32, #tpu.memory_space<vmem>>, vector<8x1xf32>
      tpu.vector_store %arg6[%c0_28, %c0_29], %47 {strides = array<i32>} : memref<8x1xf32, #tpu.memory_space<vmem>>, vector<8x1xf32>,
      %cst_30 = arith.constant 0.000000e+00 : f32
      %49 = vector.broadcast %cst_30 : f32 to vector<8x1xf32>
      %c0_31 = arith.constant 0 : index
      %c0_32 = arith.constant 0 : index
      %50 = vector.load %arg7[%c0_31, %c0_32] : memref<8x1xf32, #tpu.memory_space<vmem>>, vector<8x1xf32>
      tpu.vector_store %arg7[%c0_31, %c0_32], %49 {strides = array<i32>} : memref<8x1xf32, #tpu.memory_space<vmem>>, vector<8x1xf32>,
    } else {
    }
    %c0 = arith.constant 0 : index
    %c0_1 = arith.constant 0 : index
    %3 = memref.load %arg2[%c0, %c0_1] : memref<1x1xf32, #tpu.memory_space<smem>>
    %c0_2 = arith.constant 0 : index
    %c0_3 = arith.constant 0 : index
    %4 = vector.load %arg3[%c0_2, %c0_3] : memref<8x128xf32, #tpu.memory_space<vmem>>, vector<8x128xf32>
    %c128_i32 = arith.constant 128 : i32
    %5 = arith.muli %arg1, %c128_i32 : i32
    %c8_i32 = arith.constant 8 : i32
    %6 = arith.muli %arg0, %c8_i32 : i32
    %cst = arith.constant dense<0xFF800000> : vector<8xf32>
    %7 = vector.multi_reduction <maximumf>, %4, %cst [1] : vector<8x128xf32> to vector<8xf32>
    %8 = vector.shape_cast %7 : vector<8xf32> to vector<8x1xf32>
    %9 = vector.broadcast %3 : f32 to vector<8x1xf32>
    %10 = arith.mulf %8, %9 : vector<8x1xf32>
    %c0_4 = arith.constant 0 : index
    %c0_5 = arith.constant 0 : index
    %11 = vector.load %arg5[%c0_4, %c0_5] : memref<8x1xf32, #tpu.memory_space<vmem>>, vector<8x1xf32>
    %12 = arith.maximumf %11, %10 : vector<8x1xf32>
    %c0_6 = arith.constant 0 : index
    %c0_7 = arith.constant 0 : index
    %13 = vector.load %arg5[%c0_6, %c0_7] : memref<8x1xf32, #tpu.memory_space<vmem>>, vector<8x1xf32>
    tpu.vector_store %arg5[%c0_6, %c0_7], %12 {strides = array<i32>} : memref<8x1xf32, #tpu.memory_space<vmem>>, vector<8x1xf32>,
    %14 = vector.broadcast %3 : f32 to vector<8x128xf32>
    %15 = arith.mulf %4, %14 : vector<8x128xf32>
    %16 = vector.broadcast %12 : vector<8x1xf32> to vector<8x128xf32>
    %17 = arith.subf %15, %16 : vector<8x128xf32>
    %18 = math.exp %17 : vector<8x128xf32>
    %cst_8 = arith.constant dense<0.000000e+00> : vector<8xf32>
    %19 = vector.multi_reduction <add>, %18, %cst_8 [1] : vector<8x128xf32> to vector<8xf32>
    %20 = vector.shape_cast %19 : vector<8xf32> to vector<8x1xf32>
    %c0_9 = arith.constant 0 : index
    %c0_10 = arith.constant 0 : index
    %21 = vector.load %arg6[%c0_9, %c0_10] : memref<8x1xf32, #tpu.memory_space<vmem>>, vector<8x1xf32>
    %22 = arith.subf %11, %12 : vector<8x1xf32>
    %23 = math.exp %22 : vector<8x1xf32>
    %24 = arith.mulf %21, %23 : vector<8x1xf32>
    %25 = arith.addf %24, %20 : vector<8x1xf32>
    %c0_11 = arith.constant 0 : index
    %c0_12 = arith.constant 0 : index
    %26 = vector.load %arg6[%c0_11, %c0_12] : memref<8x1xf32, #tpu.memory_space<vmem>>, vector<8x1xf32>
    tpu.vector_store %arg6[%c0_11, %c0_12], %25 {strides = array<i32>} : memref<8x1xf32, #tpu.memory_space<vmem>>, vector<8x1xf32>,
    %c0_13 = arith.constant 0 : index
    %c0_14 = arith.constant 0 : index
    %27 = vector.load %arg7[%c0_13, %c0_14] : memref<8x1xf32, #tpu.memory_space<vmem>>, vector<8x1xf32>
    %cst_15 = arith.constant dense<0.000000e+00> : vector<8xf32>
    %28 = vector.multi_reduction <add>, %4, %cst_15 [1] : vector<8x128xf32> to vector<8xf32>
    %29 = vector.shape_cast %28 : vector<8xf32> to vector<8x1xf32>
    %cst_16 = arith.constant 1.95694724E-4 : f32
    %30 = vector.broadcast %cst_16 : f32 to vector<8x1xf32>
    %31 = arith.mulf %30, %29 : vector<8x1xf32>
    %32 = arith.addf %27, %31 : vector<8x1xf32>
    %c0_17 = arith.constant 0 : index
    %c0_18 = arith.constant 0 : index
    %33 = vector.load %arg7[%c0_17, %c0_18] : memref<8x1xf32, #tpu.memory_space<vmem>>, vector<8x1xf32>
    tpu.vector_store %arg7[%c0_17, %c0_18], %32 {strides = array<i32>} : memref<8x1xf32, #tpu.memory_space<vmem>>, vector<8x1xf32>,
    %c0_i32_19 = arith.constant 0 : i32
    %34 = arith.addi %c0_i32_19, %6 : i32
    %c128_i32_20 = arith.constant 128 : i32
    %35 = arith.addi %5, %c128_i32_20 : i32
    %36 = arith.cmpi slt, %34, %35 : i32
    %c8_i32_21 = arith.constant 8 : i32
    %37 = arith.addi %34, %c8_i32_21 : i32
    %38 = arith.cmpi sgt, %37, %5 : i32
    %39 = arith.andi %36, %38 : i1
    %40 = arith.extui %39 : i1 to i32
    %c0_i32_22 = arith.constant 0 : i32
    %41 = arith.cmpi ne, %40, %c0_i32_22 : i32
    scf.if %41 {
      %45 = tpu.iota {dimensions = array<i32: 0>} : vector<8x1xi32>
      %46 = arith.subi %34, %5 : i32
      %47 = vector.broadcast %46 : i32 to vector<8x1xi32>
      %48 = arith.addi %45, %47 : vector<8x1xi32>
      %49 = tpu.iota {dimensions = array<i32: 1>} : vector<8x128xi32>
      %50 = vector.broadcast %48 : vector<8x1xi32> to vector<8x128xi32>
      %51 = arith.cmpi eq, %49, %50 : vector<8x128xi32>
      %cst_24 = arith.constant 0.000000e+00 : f32
      %52 = vector.broadcast %cst_24 : f32 to vector<8x128xf32>
      %53 = arith.select %51, %4, %52 : vector<8x128xi1>, vector<8x128xf32>
      %cst_25 = arith.constant dense<0.000000e+00> : vector<8xf32>
      %54 = vector.multi_reduction <add>, %53, %cst_25 [1] : vector<8x128xf32> to vector<8xf32>
      %55 = vector.shape_cast %54 : vector<8xf32> to vector<8x1xf32>
      %c0_26 = arith.constant 0 : index
      %c0_27 = arith.constant 0 : index
      %56 = vector.load %arg7[%c0_26, %c0_27] : memref<8x1xf32, #tpu.memory_space<vmem>>, vector<8x1xf32>
      %cst_28 = arith.constant 0.899804294 : f32
      %57 = vector.broadcast %cst_28 : f32 to vector<8x1xf32>
      %58 = arith.mulf %57, %55 : vector<8x1xf32>
      %59 = arith.addf %56, %58 : vector<8x1xf32>
      %c0_29 = arith.constant 0 : index
      %c0_30 = arith.constant 0 : index
      %60 = vector.load %arg7[%c0_29, %c0_30] : memref<8x1xf32, #tpu.memory_space<vmem>>, vector<8x1xf32>
      tpu.vector_store %arg7[%c0_29, %c0_30], %59 {strides = array<i32>} : memref<8x1xf32, #tpu.memory_space<vmem>>, vector<8x1xf32>,
    } else {
    }
    %c3_i32 = arith.constant 3 : i32
    %42 = arith.cmpi eq, %arg1, %c3_i32 : i32
    %43 = arith.extui %42 : i1 to i32
    %c0_i32_23 = arith.constant 0 : i32
    %44 = arith.cmpi ne, %43, %c0_i32_23 : i32
    scf.if %44 {
      %c0_24 = arith.constant 0 : index
      %c0_25 = arith.constant 0 : index
      %45 = vector.load %arg5[%c0_24, %c0_25] : memref<8x1xf32, #tpu.memory_space<vmem>>, vector<8x1xf32>
      %c0_26 = arith.constant 0 : index
      %c0_27 = arith.constant 0 : index
      %46 = vector.load %arg6[%c0_26, %c0_27] : memref<8x1xf32, #tpu.memory_space<vmem>>, vector<8x1xf32>
      %47 = math.log %46 : vector<8x1xf32>
      %48 = arith.addf %45, %47 : vector<8x1xf32>
      %c0_28 = arith.constant 0 : index
      %c0_29 = arith.constant 0 : index
      %49 = vector.load %arg7[%c0_28, %c0_29] : memref<8x1xf32, #tpu.memory_space<vmem>>, vector<8x1xf32>
      %50 = vector.broadcast %3 : f32 to vector<8x1xf32>
      %51 = arith.mulf %50, %49 : vector<8x1xf32>
      %52 = arith.subf %51, %48 : vector<8x1xf32>
      %c0_30 = arith.constant 0 : index
      %c0_31 = arith.constant 0 : index
      %53 = vector.load %arg4[%c0_30, %c0_31] : memref<8x1xf32, #tpu.memory_space<vmem>>, vector<8x1xf32>
      tpu.vector_store %arg4[%c0_30, %c0_31], %52 {strides = array<i32>} : memref<8x1xf32, #tpu.memory_space<vmem>>, vector<8x1xf32>,
    } else {
    }
    return
  }
  func.func @transform_0(%arg0: i32, %arg1: i32) -> (i32, i32) {
    %c0_i32 = arith.constant 0 : i32
    %c0_i32_0 = arith.constant 0 : i32
    %c0_i32_1 = arith.constant 0 : i32
    return %c0_i32, %c0_i32_0 : i32, i32
  }
  func.func @transform_1(%arg0: i32, %arg1: i32) -> (i32, i32) {
    %c0_i32 = arith.constant 0 : i32
    return %arg0, %arg1 : i32, i32
  }
  func.func @transform_2(%arg0: i32, %arg1: i32) -> (i32, i32) {
    %c0_i32 = arith.constant 0 : i32
    %c0_i32_0 = arith.constant 0 : i32
    return %arg0, %c0_i32 : i32, i32
  }
}

</mosaic_0001>

<bundles_post_ra>
// kernel: tpu_custom_call.1
= control target key start
LH: loop header
LB: loop body
LE: loop exit
PB: predicated region body
PF: predicated region fallthrough
CT: control target
= control target key end

     0   :  { %s616_s0 = inlined_call_operand.<no memory space> [shape: f32[1,1], index: 0, kind: input, shape index: {}]   ;;  %s617_s1 = inlined_call_operand.hbm [shape: f32[8,512], index: 1, kind: input, shape index: {}]   ;;  %s618_s2 = inlined_call_operand.vmem [shape: f32[8,1], index: 2, kind: output, shape index: {}]  }
   0x1   :  { %7 = sst [smem:[#allocation5]] %s616_s0 }
   0x2   :  { %8 = vsyncpa [#allocation7], 0 }
   0x3   :  { %10 = vsyncpa [#allocation7 + $0x1], 0  ;;  %s510_s11 = smov 0   ;;  %s512_s12 = smov 0  }
   0x4   :  { %s514_s13 = smov 0   ;;  %s516_s14 = smov 0  }
   0x5   :  { %s518_s15 = smov 0   ;;  %s520_s16 = smov 0  }
   0x6 LB: > { %s328_s0 = sadd.s32 4294967295, %s486_s16   ;;  %s25_s17 = sadd.s32 1, %s482_s15  ;;  %s486_s16 = sphi %s520_s16, %s16_s16   ;;  %s482_s15 = sphi %s518_s15, %s626_s15   ;;  %s478_s14 = sphi %s516_s14, %s625_s14   ;;  %s474_s13 = sphi %s514_s13, %s624_s13   ;;  %s470_s12 = sphi %s512_s12, %s623_s12   ;;  %s466_s11 = sphi %s510_s11, %s622_s11  }
   0x7   : > { %p26_p0 = scmp.ge.s32.totalorder %s25_s17, 4  ;;  %s58_s18 = sadd.s32 1, %s474_s13 }
   0x8   : > { %p65_p1 = scmp.ne.s32.totalorder %s474_s13, %s470_s12  ;;  %p66_p2 = scmp.eq.s32.totalorder %s486_s16, 0 }
   0x9   : > { %s628_s17 = smov (%p26_p0, %s25_s17), 0  ;;  %p71_p4 = scmp.ne.s32.totalorder %s470_s12, %s466_s11 }
   0xa   : > { %p546_p3 = por %p66_p2, %p65_p1  ;;  %s54_s20 = ssub.s32 %s482_s15, %s628_s17 }
   0xb   : > { %p72_p5 = scmp.eq.s32.totalorder %s328_s0, 0  ;;  %p56_p6 = scmp.eq.s32.totalorder %s54_s20, 0 }
   0xc   : > { %p349_p8 = scmp.lt.s32.totalorder %s486_s16, 4  ;;  %s124_s23 = sand.u32 1, %s474_s13  }
   0xd   : > { %p553_p7 = por %p72_p5, %p71_p4  ;;  %s332_s24 = sshll.u32 %s482_s15, 7 }
   0xe   : > { %s559_s22 = scalar_select %p56_p6, %s474_s13, %s58_s18  }
   0xf   : > { %s331_s25 = sshll.u32 %s124_s23, 3  ;;  %s135_s28 = scalar_lea.hbm %s617_s1, %s332_s24 }
  0x10   : > { %s128_s29 = scalar_lea.vmem [#allocation6], %s331_s25  ;;  %p568_p9 = pnand %p349_p8, %p546_p3 }
  0x11   : > { %s137_s30 = sshll.u32 %s128_s29, 4  ;;  %p333_p10 = scmp.ge.s32.totalorder %s486_s16, 1  ;;  %s138_s30 = int_to_ptr.vmem [resolvable:$true] %s137_s30 }
  0x12   : > { %p142_p11 = scmp.lt.s32.totalorder %s486_s16, 5  ;;  %s125_s4 = scalar_lea.sflag [#allocation7], %s124_s23 }
  0x13   : > { %p410_p12 = pneg %p568_p9  ;;  %s421_s5 = scalar_lea.vmem %s138_s30, 128 }
  0x14   : > { %p422_p13 = scmp.ne.s32.totalorder %s138_s30, %s421_s5  ;;  %s488_s6 = smov [#allocation6]  }
  0x15   : > { %s426_s7 = sshll.u32 %s488_s6, 4  ;;  %s427_s7 = int_to_ptr.vmem [resolvable:$false] %s426_s7 }
  0x16   : > { %p424_p0 = pnand %p422_p13, %p410_p12  ;;  %s428_s8 = scalar_lea.vmem %s427_s7, 256 }
  0x17   : > { %p429_p2 = scmp.lt.s32.totalorder %s138_s30, %s427_s7  ;;  %p430_p3 = scmp.lt.s32.totalorder %s428_s8, %s421_s5 }
  0x18   : > { %p425_p1 = pneg %p424_p0 }
  0x19   : > { %p431_p4 = por %p430_p3, %p429_p2 }
  0x1b   : > { %p432_p5 = pnand %p431_p4, %p425_p1 }
  0x1d   : > { %435 = shalt.err (!%p432_p5)
}
  0x1e   : > { %348 = dma.hbm_to_vmem [thread:$0]  (!%p568_p9), %s135_s28, 128, %s138_s30, %s125_s4  }
  0x1f   : > { %p143_p6 = pnand %p333_p10, %p142_p11 }
  0x20   : > { %s148_s9 = sand.u32 (!%p143_p6), 1, %s470_s12  }
  0x21   : > { %146 = sbr.rel (%p143_p6) target bundleno = 655 (0x28f), region = 28  ;;  %s334_s10 = sshll.u32 (!%p143_p6), %s148_s9, 3 }
  0x22   : > { %s149_s11 = scalar_lea.sflag (!%p143_p6), [#allocation7], %s148_s9  ;;  %s152_s0 = scalar_lea.vmem (!%p143_p6), [#allocation6], %s334_s10 }
  0x26   : > { %461 = dma.done.wait (%p553_p7), %s149_s11, 128  }
  0x27   : > { %463 = vsyncadd (%p553_p7), %s149_s11, 4294967168  ;;  %p335_p8 = scmp.ne.s32.totalorder %s478_s14, 0 }
  0x29   : > { %179 = sbr.rel (%p335_p8) target bundleno = 49 (0x31), region = 36 }
  0x2e   : > { %vm180_vm0 = vcmask 7168   ;;  %v489_v0 = vmov -inf   ;;  %v490_v1 = vmov 0.0  }
  0x2f   : > { %181 = vst.msk [vmem:[#allocation2] sm:$0xff] %vm180_vm0, %v489_v0  ;;  %182 = vst.msk [vmem:[#allocation3] sm:$0xff] %vm180_vm0, %v490_v1 }
  0x30   : > { %183 = vst.msk [vmem:[#allocation4] sm:$0xff] %vm180_vm0, %v490_v1 }
  0x31 PF: > { %v185_v2 = vld [vmem:[%s152_s0] sm:$0xff]  ;;  %v491_v3 = vmov 0   ;;  %s184_s18 = sld [smem:[#allocation5]]  ;;  %vm194_vm1 = vcmask 7168   ;;  %s336_s19 = sshll.u32 %s478_s14, 7 }
  0x32   : > { %188 = vmax.xlane.f32.xlu0 %v185_v2  ;;  %215 = vadd.xlane.f32.xlu1 %v185_v2  ;;  %s220_s20 = sadd.s32 128, %s336_s19  ;;  %p338_p9 = scmp.lt.s32.totalorder %s336_s19, 8 }
  0x33   : > { %401 = vset.pattern.permute.xlu0 %v491_v3  ;;  %p337_p7 = scmp.gt.s32.totalorder %s220_s20, 0 }
  0x35   : > { %p224_p10 = pnand %p338_p9, %p337_p7 }
  0x36   : > { %v192_v5 = vld [vmem:[#allocation2] sm:$0xff]  ;;  %v207_v21 = vld [vmem:[#allocation3] sm:$0xff]  ;;  %s230_s21 = ssub.s32 (!%p224_p10), 0, %s336_s19 }
  0x37   : > { %v190_v4 = vstv %s184_s18  ;;  %v214_v10 = vld [vmem:[#allocation4] sm:$0xff] }
  0x38   : > { %v196_v14 = vmul.f32 %v190_v4, %v185_v2 }
  0xbb   : > { %v189_v6 = vpop.xlane.xlu0 %188  ;;  %v216_v11 = vpop.xlane.xlu1 %215 }
  0xbc   : > { %v191_v7 = vmul.f32 %v190_v4, %v189_v6  ;;  %v217_v12 = vmul.f32 0.00019569472, %v216_v11 }
  0xbe   : > { %v193_v8 = vmax.f32 %v192_v5, %v191_v7  ;;  %v218_v13 = vadd.f32 %v217_v12, %v214_v10 }
  0xc0   : > { %195 = vst.msk [vmem:[#allocation2] sm:$0xff] %vm194_vm1, %v193_v8  ;;  %v208_v9 = vsub.f32 %v192_v5, %v193_v8  ;;  %199 = vperm.xlu0 %401, %v193_v8   ;;  %219 = vst.msk [vmem:[#allocation4] sm:$0xff] %vm194_vm1, %v218_v13 }
  0xc2   : > { %v209_v19 = vmul.f32 1.442695, %v208_v9 }
 0x13b   : > { %v200_v15 = vpop.permute.xlu0 %199 }
 0x13c   : > { %v202_v16 = vsub.f32 %v196_v14, %v200_v15 }
 0x13e   : > { %v203_v17 = vmul.f32 1.442695, %v202_v16 }
 0x140   : > { %402 = vpow2.f32 %v203_v17 }
 0x141   : > { %404 = vpow2.f32 %v209_v19 }
 0x14d   : > { %v403_v18 = vpop.eup %402 }
 0x14e   : > { %205 = vadd.xlane.f32.xlu1 %v403_v18  ;;  %v405_v20 = vpop.eup %404 }
 0x14f   : > { %v211_v22 = vmul.f32 %v405_v20, %v207_v21 }
 0x1d6   : > { %227 = sbr.rel (%p224_p10) target bundleno = 626 (0x272), region = 40 }
 0x1d7   : > { %v206_v23 = vpop.xlane.xlu1 %205 }
 0x1d8   : > { %v212_v24 = vadd.f32 %v211_v22, %v206_v23 }
 0x1da   : > { %213 = vst.msk [vmem:[#allocation3] sm:$0xff] %vm194_vm1, %v212_v24 }
 0x1db   : > { %v228_v25 = vlaneseq  ;;  %v231_v26 = vstv %s230_s21  ;;  %v239_v32 = vld [vmem:[#allocation4] sm:$0xff] }
 0x1dd   : > { %v229_v27 = vshrl.u32 %v228_v25, 7  ;;  %v234_v28 = vand.u32 127, %v228_v25 }
 0x1df   : > { %v232_v29 = vadd.s32 %v231_v26, %v229_v27 }
 0x1e1   : > { %vm235_vm2 = vcmp.eq.s32.totalorder %v234_v28, %v232_v29 }
 0x1e2   : > { %v236_v30 = vsel %vm235_vm2, %v185_v2, 0.0 }
 0x1e3   : > { %237 = vadd.xlane.f32.xlu0 %v236_v30 }
 0x26c   : > { %v238_v31 = vpop.xlane.xlu0 %237 }
 0x26d   : > { %v240_v33 = vmul.f32 0.8998043, %v238_v31 }
 0x26f   : > { %v241_v34 = vadd.f32 %v240_v33, %v239_v32 }
 0x271   : > { %242 = vst.msk [vmem:[#allocation4] sm:$0xff] %vm194_vm1, %v241_v34 }
 0x272 PF: > { %p339_p11 = scmp.ne.s32.totalorder %s478_s14, 3 }
 0x274   : > { %246 = sbr.rel (%p339_p11) target bundleno = 655 (0x28f), region = 44 }
 0x279   : > { %v248_v35 = vld [vmem:[#allocation3] sm:$0xff]  ;;  %v252_v36 = vld [vmem:[#allocation4] sm:$0xff]  ;;  %v247_v38 = vld [vmem:[#allocation2] sm:$0xff] }
 0x27a   : > { %406 = vlog2.f32 %v248_v35  ;;  %v253_v40 = vmul.f32 %v252_v36, %v190_v4 }
 0x287   : > { %v407_v37 = vpop.eup %406 }
 0x288   : > { %v250_v39 = vmul.f32 0.6931472, %v407_v37 }
 0x28a   : > { %v251_v41 = vadd.f32 %v250_v39, %v247_v38 }
 0x28c   : > { %v254_v42 = vsub.f32 %v253_v40, %v251_v41 }
 0x28e   : > { %255 = vst.msk [vmem:[%s618_s2] sm:$0xff] %vm194_vm1, %v254_v42 }
 0x28f PF: > { %s16_s16 = sadd.s32 1, %s486_s16   ;;  %s622_s11 = smov %s470_s12 }
 0x290   : > { %p13_p12 = scmp.ge.s32.totalorder %s16_s16, 6   ;;  %s623_s12 = smov %s474_s13 }
 0x291   : > { %s624_s13 = smov %s559_s22  ;;  %s625_s14 = smov %s482_s15 }
 0x292   : > { %s626_s15 = smov %s628_s17  ;;  %15 = sbr.rel (!%p13_p12) target bundleno = 6 (0x6), region = 80 }
 0x297   :  { %275 = vsyncpa [#allocation7], 1 }
 0x298   :  { %277 = vsyncpa [#allocation7 + $0x1], 1 }

</bundles_post_ra>
